<compile_context>
chip_gen: v7x
topology: tpu7x:2x2x1
jax: 0.10.0
libtpu: 0.0.40
codegen_flags: <defaults>
</compile_context>

<pallas_src>
import functools

import jax
import jax.numpy as jnp
from jax import lax
from jax.experimental import pallas as pl
from jax.experimental.pallas import tpu as pltpu

LAYER_IDS = [2, 7, 12, 21, 30]
_VGG16_CFG = [64, 64, "M", 128, 128, "M", 256, 256, 256, "M",
              512, 512, 512, "M", 512, 512, 512, "M"]


def _build_features():
    layers, c_in = [], 3
    for v in _VGG16_CFG:
        if v == "M":
            layers.append(("pool",))
        else:
            layers.append(("conv", c_in, v))
            layers.append(("relu",))
            c_in = v
    return layers


FEATURES = _build_features()


def _pick_tile(n, target):
    """Largest tile size <= target that divides n.  (Note: degrades for H not
    divisible by the target; VGG resolutions 224/112/56/28/14 all pick >= 14.)"""
    t = max(1, min(int(target), int(n)))
    while n % t:
        t -= 1
    return t


# --------------------------------------------------------------------------
# Conv2d 3x3, stride 1, padding 1, ReLU fused into the epilogue.
# Grid = (batch, row_tiles).  Each step computes TH output rows as 3 MXU
# matmuls (K = 3*Cin, one per dy tap row) -- or a single matmul with K = 9*Cin
# for the Cin=3 stem -- with f32 accumulation.
# Outputs: post-ReLU bf16 activation (+ optional pre-ReLU f32 feature).
# --------------------------------------------------------------------------
def _conv3x3_kernel(xb_ref, xt_ref, xu_ref, w_ref, b_ref, act_ref, *maybe_feat,
                    TH, W, fuse_all, collect):
    # xb_ref: (1, TH, W, Cin)  body rows of the tile                (bf16)
    # xt_ref: (1, 1,  W, Cin)  row above the tile (clamped index)   (bf16)
    # xu_ref: (1, 1,  W, Cin)  row below the tile (clamped index)   (bf16)
    # w_ref : (3, 3*Cin, Cout) or (1, 9*Cin, Cout)                  (bf16)
    # b_ref : (1, Cout)                                             (f32)
    # act_ref  : (1, TH, W, Cout) post-ReLU activation              (bf16)
    # maybe_feat[0]: (1, TH, W, Cout) pre-ReLU feature (if collect) (f32)
    t = pl.program_id(1)
    T = pl.num_programs(1)
    Cin = xb_ref.shape[-1]
    Cout = act_ref.shape[-1]

    zero_row = jnp.zeros_like(xt_ref[0])              # (1, W, Cin)
    top = jnp.where(t > 0, xt_ref[0], zero_row)       # zero halo at image top
    bot = jnp.where(t < T - 1, xu_ref[0], zero_row)   # zero halo at image bottom
    rows = jnp.concatenate([top, xb_ref[0], bot], axis=0)     # (TH+2, W, Cin)

    # Column-shifted slabs (dx = -1, 0, +1), fused along K: (TH+2, W, 3*Cin).
    zcol = jnp.zeros((TH + 2, 1, Cin), rows.dtype)
    left = jnp.concatenate([zcol, rows[:, :W - 1, :]], axis=1)   # input col j-1
    right = jnp.concatenate([rows[:, 1:, :], zcol], axis=1)      # input col j+1
    lhs = jnp.concatenate([left, rows, right], axis=-1)          # K = dx*Cin+cin

    if fuse_all:
        # Fold the three dy taps into K as well: one (TH*W, 9*Cin) matmul.
        lhs9 = jnp.concatenate(
            [lhs[0:TH], lhs[1:TH + 1], lhs[2:TH + 2]], axis=-1)  # (TH, W, 9*Cin)
        acc = jnp.dot(lhs9.reshape(TH * W, 9 * Cin), w_ref[0],
                      preferred_element_type=jnp.float32)
    else:
        acc = jnp.dot(lhs[0:TH].reshape(TH * W, 3 * Cin), w_ref[0],
                      preferred_element_type=jnp.float32)
        for dy in (1, 2):
            acc = acc + jnp.dot(lhs[dy:dy + TH].reshape(TH * W, 3 * Cin),
                                w_ref[dy], preferred_element_type=jnp.float32)

    acc = acc + b_ref[...]                            # bias once per tile
    if collect:                                       # pre-ReLU f32 feature
        maybe_feat[0][0] = acc.reshape(TH, W, Cout)
    act_ref[0] = jnp.maximum(acc, 0.0).reshape(TH, W, Cout).astype(act_ref.dtype)


def conv3x3(x, w, b, *, collect, row_tile=32):
    """x: (N,H,W,Cin), w: (3,3,Cin,Cout), b: (Cout,).
    Returns post-ReLU bf16 activation, plus pre-ReLU f32 feature if collect."""
    N, H, W, Cin = x.shape
    Cout = w.shape[-1]
    TH = _pick_tile(H, row_tile)
    T = H // TH

    fuse_all = (9 * Cin <= 32)           # only the RGB stem (Cin=3) in practice
    if fuse_all:
        wf = w.reshape(1, 9 * Cin, Cout).astype(jnp.bfloat16)
        ndy, KW = 1, 9 * Cin
    else:
        wf = w.reshape(3, 3 * Cin, Cout).astype(jnp.bfloat16)
        ndy, KW = 3, 3 * Cin
    bf = b.reshape(1, Cout).astype(jnp.float32)
    xb = x.astype(jnp.bfloat16)

    out_shapes = [jax.ShapeDtypeStruct((N, H, W, Cout), jnp.bfloat16)]
    out_specs = [pl.BlockSpec((1, TH, W, Cout), lambda n, t: (n, t, 0, 0))]
    if collect:
        out_shapes.append(jax.ShapeDtypeStruct((N, H, W, Cout), jnp.float32))
        out_specs.append(pl.BlockSpec((1, TH, W, Cout), lambda n, t: (n, t, 0, 0)))

    kernel = functools.partial(_conv3x3_kernel, TH=TH, W=W,
                               fuse_all=fuse_all, collect=collect)
    outs = pl.pallas_call(
        kernel,
        out_shape=tuple(out_shapes),
        grid=(N, T),
        in_specs=[
            # body rows of the tile
            pl.BlockSpec((1, TH, W, Cin), lambda n, t: (n, t, 0, 0)),
            # 1-row top halo (clamped at the border, masked in-kernel)
            pl.BlockSpec((1, 1, W, Cin),
                         lambda n, t: (n, jnp.maximum(t * TH - 1, 0), 0, 0)),
            # 1-row bottom halo (clamped at the border, masked in-kernel)
            pl.BlockSpec((1, 1, W, Cin),
                         lambda n, t: (n, jnp.minimum((t + 1) * TH, H - 1), 0, 0)),
            pl.BlockSpec((ndy, KW, Cout), lambda n, t: (0, 0, 0)),
            pl.BlockSpec((1, Cout), lambda n, t: (0, 0)),
        ],
        out_specs=tuple(out_specs),
        compiler_params=pltpu.CompilerParams(
            dimension_semantics=("parallel", "parallel"),
            vmem_limit_bytes=48 * 1024 * 1024),
    )(xb, xb, xb, wf, bf)
    if collect:
        return outs[0], outs[1]
    return outs[0]


# --------------------------------------------------------------------------
# MaxPool2d 2x2 stride 2, row-tiled.  (Input is already post-ReLU bf16.)
# Pooling is pure reshape + jnp.maximum (no strided ref indexing).
# --------------------------------------------------------------------------
def _maxpool2x2_kernel(x_ref, o_ref, *, THP, W, W2):
    x = x_ref[0]                                   # (2*THP, W, C)
    C = x.shape[-1]
    x = x.reshape(THP, 2, W, C)
    r = jnp.maximum(x[:, 0, :, :], x[:, 1, :, :])  # (THP, W, C)  row pairs
    r = r.reshape(THP, W2, 2, C)
    o = jnp.maximum(r[:, :, 0, :], r[:, :, 1, :])  # (THP, W2, C) column pairs
    o_ref[0] = o.astype(o_ref.dtype)


def maxpool2x2(x, *, row_tile=32):
    N, H, W, C = x.shape
    H2, W2 = H // 2, W // 2
    THP = _pick_tile(H2, max(1, row_tile // 2))
    T = H2 // THP
    kernel = functools.partial(_maxpool2x2_kernel, THP=THP, W=W, W2=W2)
    return pl.pallas_call(
        kernel,
        out_shape=jax.ShapeDtypeStruct((N, H2, W2, C), x.dtype),
        grid=(N, T),
        in_specs=[pl.BlockSpec((1, 2 * THP, W, C), lambda n, t: (n, t, 0, 0))],
        out_specs=pl.BlockSpec((1, THP, W2, C), lambda n, t: (n, t, 0, 0)),
        compiler_params=pltpu.CompilerParams(
            dimension_semantics=("parallel", "parallel")),
    )(x)


# --------------------------------------------------------------------------
# Parameter init (deterministic, VGG16 conv shapes) and forward pass.
# --------------------------------------------------------------------------
def init_params(key, id_max):
    params = {}
    for i in range(id_max):
        layer = FEATURES[i]
        if layer[0] == "conv":
            _, cin, cout = layer
            key, kw, kb = jax.random.split(key, 3)
            scale = (2.0 / (9.0 * cin)) ** 0.5
            params[i] = {
                "w": scale * jax.random.normal(kw, (3, 3, cin, cout), jnp.float32),
                "b": 0.01 * jax.random.normal(kb, (cout,), jnp.float32),
            }
    return params


def vgg_features_forward(params, z_nchw, levels, row_tile=32):
    """Semantics of _netVGGFeatures.forward: returns activations at
    layer_ids[:levels] (conv outputs are pre-ReLU, matching nn.Sequential
    indexing), as NCHW f32 arrays.  ReLUs are fused into the conv epilogues;
    the bf16 inter-layer activations match the reference's bf16-MXU policy."""
    layer_ids = LAYER_IDS[:levels]
    id_max = layer_ids[-1] + 1
    x = jnp.transpose(z_nchw, (0, 2, 3, 1)).astype(jnp.bfloat16)  # NCHW -> NHWC
    outputs = []
    for i in range(id_max):
        layer = FEATURES[i]
        if layer[0] == "conv":
            collect = i in layer_ids
            if collect:
                x, feat = conv3x3(x, params[i]["w"], params[i]["b"],
                                  collect=True, row_tile=row_tile)
                outputs.append(feat)                 # pre-ReLU f32 feature
            else:
                x = conv3x3(x, params[i]["w"], params[i]["b"],
                            collect=False, row_tile=row_tile)
        elif layer[0] == "relu":
            # ReLU already applied in the producing conv's epilogue.
            if i in layer_ids:                       # not hit for LAYER_IDS
                outputs.append(x.astype(jnp.float32))
        else:  # pool
            x = maxpool2x2(x, row_tile=row_tile)
            if i in layer_ids:                       # layer 30 at levels=5
                outputs.append(x.astype(jnp.float32))
    return [jnp.transpose(o, (0, 3, 1, 2)) for o in outputs]   # back to NCHW


# Pure-JAX reference mirroring the same precision policy (bf16 MXU inputs,
# f32 accumulation) for verification.
def vgg_features_reference(params, z_nchw, levels):
    layer_ids = LAYER_IDS[:levels]
    id_max = layer_ids[-1] + 1
    z = z_nchw
    outputs = []
    for i in range(id_max):
        layer = FEATURES[i]
        if layer[0] == "conv":
            z = lax.conv_general_dilated(
                z.astype(jnp.bfloat16), params[i]["w"].astype(jnp.bfloat16),
                window_strides=(1, 1), padding=((1, 1), (1, 1)),
                dimension_numbers=("NCHW", "HWIO", "NCHW"),
                preferred_element_type=jnp.float32)
            z = z + params[i]["b"].reshape(1, -1, 1, 1)
        elif layer[0] == "relu":
            z = jnp.maximum(z, 0.0)
        else:
            z = lax.reduce_window(z, -jnp.inf, lax.max,
                                  (1, 1, 2, 2), (1, 1, 2, 2), "VALID")
        if i in layer_ids:
            outputs.append(z)
    return outputs


if __name__ == "__main__":
    levels = 3                      # run through VGG features[0..12]
    key = jax.random.PRNGKey(0)
    kz, kp = jax.random.split(key)
    z = jax.random.normal(kz, (2, 3, 16, 16), jnp.float32)   # NCHW like PyTorch

    id_max = LAYER_IDS[:levels][-1] + 1
    params = init_params(kp, id_max)

    # row_tile=8 so the 16x16 demo exercises the multi-tile / halo path.
    outs = vgg_features_forward(params, z, levels, row_tile=8)
    outs = jax.block_until_ready(outs)

    refs = vgg_features_reference(params, z, levels)
    assert len(outs) == levels
    for o, r in zip(outs, refs):
        assert o.shape == r.shape and o.dtype == r.dtype
        err = float(jnp.max(jnp.abs(o - r)))
        tol = 1e-2 * max(1.0, float(jnp.max(jnp.abs(r))))   # bf16 MXU tolerance
        assert err < tol, f"mismatch: max abs err {err} (tol {tol})"

    print("KERNEL_OK")
</pallas_src>

<mosaic_0001>
module attributes {stable_mosaic.version = 11 : i64} {
  func.func @_conv3x3_kernel(%arg0: i32, %arg1: i32, %arg2: memref<1x8x16x3xbf16, #tpu.memory_space<vmem>>, %arg3: memref<1x1x16x3xbf16, #tpu.memory_space<vmem>>, %arg4: memref<1x1x16x3xbf16, #tpu.memory_space<vmem>>, %arg5: memref<1x27x64xbf16, #tpu.memory_space<vmem>>, %arg6: memref<1x64xf32, #tpu.memory_space<vmem>>, %arg7: memref<1x8x16x64xbf16, #tpu.memory_space<vmem>>) attributes {dimension_semantics = [#tpu.dimension_semantics<parallel>, #tpu.dimension_semantics<parallel>], iteration_bounds = array<i64: 2, 2>, scalar_prefetch = 0 : i64, scratch_operands = 0 : i64, tpu.core_type = #tpu.core_type<tc>, window_params = [{transform_indices = @transform_0, window_bounds = array<i64: 1, 8, 16, 3>}, {transform_indices = @transform_1, window_bounds = array<i64: 1, 1, 16, 3>}, {transform_indices = @transform_2, window_bounds = array<i64: 1, 1, 16, 3>}, {pipeline_mode = #tpu.pipeline_mode<synchronous>, transform_indices = @transform_3, window_bounds = array<i64: 1, 27, 64>}, {pipeline_mode = #tpu.pipeline_mode<synchronous>, transform_indices = @transform_4, window_bounds = array<i64: 1, 64>}, {transform_indices = @transform_5, window_bounds = array<i64: 1, 8, 16, 64>}]} {
    %cst = arith.constant 0.000000e+00 : bf16
    %0 = vector.broadcast %cst : bf16 to vector<1x16x3xbf16>
    %c0_i32 = arith.constant 0 : i32
    %1 = arith.cmpi sgt, %arg1, %c0_i32 : i32
    %c0 = arith.constant 0 : index
    %c0_0 = arith.constant 0 : index
    %c0_1 = arith.constant 0 : index
    %c0_2 = arith.constant 0 : index
    %2 = vector.load %arg3[%c0, %c0_0, %c0_1, %c0_2] : memref<1x1x16x3xbf16, #tpu.memory_space<vmem>>, vector<1x1x16x3xbf16>
    %3 = vector.shape_cast %2 : vector<1x1x16x3xbf16> to vector<1x16x3xbf16>
    %4 = arith.select %1, %3, %0 : vector<1x16x3xbf16>
    %c1_i32 = arith.constant 1 : i32
    %5 = arith.cmpi slt, %arg1, %c1_i32 : i32
    %c0_3 = arith.constant 0 : index
    %c0_4 = arith.constant 0 : index
    %c0_5 = arith.constant 0 : index
    %c0_6 = arith.constant 0 : index
    %6 = vector.load %arg4[%c0_3, %c0_4, %c0_5, %c0_6] : memref<1x1x16x3xbf16, #tpu.memory_space<vmem>>, vector<1x1x16x3xbf16>
    %7 = vector.shape_cast %6 : vector<1x1x16x3xbf16> to vector<1x16x3xbf16>
    %8 = arith.select %5, %7, %0 : vector<1x16x3xbf16>
    %c0_7 = arith.constant 0 : index
    %c0_8 = arith.constant 0 : index
    %c0_9 = arith.constant 0 : index
    %c0_10 = arith.constant 0 : index
    %9 = vector.load %arg2[%c0_7, %c0_8, %c0_9, %c0_10] : memref<1x8x16x3xbf16, #tpu.memory_space<vmem>>, vector<1x8x16x3xbf16>
    %10 = vector.shape_cast %9 : vector<1x8x16x3xbf16> to vector<8x16x3xbf16>
    %11 = tpu.concatenate %4, %10, %8 in 0 : vector<1x16x3xbf16>, vector<8x16x3xbf16>, vector<1x16x3xbf16> -> vector<10x16x3xbf16>
    %cst_11 = arith.constant 0.000000e+00 : bf16
    %12 = vector.broadcast %cst_11 : bf16 to vector<10x1x3xbf16>
    %13 = vector.extract_strided_slice %11 {offsets = [0, 0, 0], sizes = [10, 15, 3], strides = [1, 1, 1]} : vector<10x16x3xbf16> to vector<10x15x3xbf16>
    %14 = tpu.concatenate %12, %13 in 1 : vector<10x1x3xbf16>, vector<10x15x3xbf16> -> vector<10x16x3xbf16>
    %15 = vector.extract_strided_slice %11 {offsets = [0, 1, 0], sizes = [10, 15, 3], strides = [1, 1, 1]} : vector<10x16x3xbf16> to vector<10x15x3xbf16>
    %16 = tpu.concatenate %15, %12 in 1 : vector<10x15x3xbf16>, vector<10x1x3xbf16> -> vector<10x16x3xbf16>
    %17 = tpu.concatenate %14, %11, %16 in 2 : vector<10x16x3xbf16>, vector<10x16x3xbf16>, vector<10x16x3xbf16> -> vector<10x16x9xbf16>
    %18 = vector.extract_strided_slice %17 {offsets = [0, 0, 0], sizes = [8, 16, 9], strides = [1, 1, 1]} : vector<10x16x9xbf16> to vector<8x16x9xbf16>
    %19 = vector.extract_strided_slice %17 {offsets = [1, 0, 0], sizes = [8, 16, 9], strides = [1, 1, 1]} : vector<10x16x9xbf16> to vector<8x16x9xbf16>
    %20 = vector.extract_strided_slice %17 {offsets = [2, 0, 0], sizes = [8, 16, 9], strides = [1, 1, 1]} : vector<10x16x9xbf16> to vector<8x16x9xbf16>
    %21 = tpu.concatenate %18, %19, %20 in 2 : vector<8x16x9xbf16>, vector<8x16x9xbf16>, vector<8x16x9xbf16> -> vector<8x16x27xbf16>
    %22 = vector.shape_cast %21 : vector<8x16x27xbf16> to vector<128x27xbf16>
    %c0_12 = arith.constant 0 : index
    %c0_13 = arith.constant 0 : index
    %c0_14 = arith.constant 0 : index
    %23 = vector.load %arg5[%c0_12, %c0_13, %c0_14] : memref<1x27x64xbf16, #tpu.memory_space<vmem>>, vector<1x27x64xbf16>
    %24 = vector.shape_cast %23 : vector<1x27x64xbf16> to vector<27x64xbf16>
    %cst_15 = arith.constant dense<0.000000e+00> : vector<128x64xf32>
    %25 = tpu.matmul %22, %24, %cst_15 {dimension_numbers = #tpu.dot_dimension_numbers<[1], [0], [0], [1], [0, 0, 1, 1], [], []>} : vector<128x27xbf16>, vector<27x64xbf16>, vector<128x64xf32> -> vector<128x64xf32>
    %c0_16 = arith.constant 0 : index
    %c0_17 = arith.constant 0 : index
    %26 = vector.load %arg6[%c0_16, %c0_17] : memref<1x64xf32, #tpu.memory_space<vmem>>, vector<1x64xf32>
    %27 = vector.broadcast %26 : vector<1x64xf32> to vector<128x64xf32>
    %28 = arith.addf %25, %27 : vector<128x64xf32>
    %cst_18 = arith.constant 0.000000e+00 : f32
    %29 = vector.broadcast %cst_18 : f32 to vector<128x64xf32>
    %30 = arith.maximumf %28, %29 : vector<128x64xf32>
    %31 = vector.shape_cast %30 : vector<128x64xf32> to vector<8x16x64xf32>
    %32 = arith.truncf %31 : vector<8x16x64xf32> to vector<8x16x64xbf16>
    %c0_19 = arith.constant 0 : index
    %c0_20 = arith.constant 0 : index
    %c0_21 = arith.constant 0 : index
    %c0_22 = arith.constant 0 : index
    %33 = vector.load %arg7[%c0_19, %c0_20, %c0_21, %c0_22] : memref<1x8x16x64xbf16, #tpu.memory_space<vmem>>, vector<1x8x16x64xbf16>
    %34 = vector.shape_cast %33 : vector<1x8x16x64xbf16> to vector<8x16x64xbf16>
    %35 = vector.shape_cast %32 : vector<8x16x64xbf16> to vector<1x8x16x64xbf16>
    tpu.vector_store %arg7[%c0_19, %c0_20, %c0_21, %c0_22], %35 {strides = array<i32>} : memref<1x8x16x64xbf16, #tpu.memory_space<vmem>>, vector<1x8x16x64xbf16>,
    return
  }
  func.func @transform_0(%arg0: i32, %arg1: i32) -> (i32, i32, i32, i32) {
    %c0_i32 = arith.constant 0 : i32
    %c0_i32_0 = arith.constant 0 : i32
    %c0_i32_1 = arith.constant 0 : i32
    return %arg0, %arg1, %c0_i32, %c0_i32_0 : i32, i32, i32, i32
  }
  func.func @transform_1(%arg0: i32, %arg1: i32) -> (i32, i32, i32, i32) {
    %c8_i32 = arith.constant 8 : i32
    %0 = arith.muli %arg1, %c8_i32 : i32
    %c1_i32 = arith.constant 1 : i32
    %1 = arith.subi %0, %c1_i32 : i32
    %c0_i32 = arith.constant 0 : i32
    %2 = arith.maxsi %1, %c0_i32 : i32
    %c0_i32_0 = arith.constant 0 : i32
    %c0_i32_1 = arith.constant 0 : i32
    %c0_i32_2 = arith.constant 0 : i32
    return %arg0, %2, %c0_i32_0, %c0_i32_1 : i32, i32, i32, i32
  }
  func.func @transform_2(%arg0: i32, %arg1: i32) -> (i32, i32, i32, i32) {
    %c1_i32 = arith.constant 1 : i32
    %0 = arith.addi %arg1, %c1_i32 : i32
    %c8_i32 = arith.constant 8 : i32
    %1 = arith.muli %0, %c8_i32 : i32
    %c15_i32 = arith.constant 15 : i32
    %2 = arith.minsi %1, %c15_i32 : i32
    %c0_i32 = arith.constant 0 : i32
    %c0_i32_0 = arith.constant 0 : i32
    %c0_i32_1 = arith.constant 0 : i32
    return %arg0, %2, %c0_i32, %c0_i32_0 : i32, i32, i32, i32
  }
  func.func @transform_3(%arg0: i32, %arg1: i32) -> (i32, i32, i32) {
    %c0_i32 = arith.constant 0 : i32
    %c0_i32_0 = arith.constant 0 : i32
    %c0_i32_1 = arith.constant 0 : i32
    %c0_i32_2 = arith.constant 0 : i32
    return %c0_i32, %c0_i32_0, %c0_i32_1 : i32, i32, i32
  }
  func.func @transform_4(%arg0: i32, %arg1: i32) -> (i32, i32) {
    %c0_i32 = arith.constant 0 : i32
    %c0_i32_0 = arith.constant 0 : i32
    %c0_i32_1 = arith.constant 0 : i32
    return %c0_i32, %c0_i32_0 : i32, i32
  }
  func.func @transform_5(%arg0: i32, %arg1: i32) -> (i32, i32, i32, i32) {
    %c0_i32 = arith.constant 0 : i32
    %c0_i32_0 = arith.constant 0 : i32
    %c0_i32_1 = arith.constant 0 : i32
    return %arg0, %arg1, %c0_i32, %c0_i32_0 : i32, i32, i32, i32
  }
}

</mosaic_0001>

<bundles_post_ra>
// kernel: tpu_custom_call.1
= control target key start
LH: loop header
LB: loop body
LE: loop exit
PB: predicated region body
PF: predicated region fallthrough
CT: control target
= control target key end

     0   :  { %10 = vsyncpa [#allocation3], 0  ;;  %s2024_s0 = inlined_call_operand.vmem [shape: bf16[2,16,16,3], index: 0, kind: input, shape index: {}]   ;;  %s2025_s1 = inlined_call_operand.vmem [shape: bf16[2,16,16,3], index: 1, kind: input, shape index: {}]   ;;  %s2026_s2 = inlined_call_operand.vmem [shape: bf16[2,16,16,3], index: 2, kind: input, shape index: {}]   ;;  %s2027_s3 = inlined_call_operand.vmem [shape: bf16[1,27,64], index: 3, kind: input, shape index: {}]   ;;  %s2028_s4 = inlined_call_operand.vmem [shape: f32[1,64], index: 4, kind: input, shape index: {}]   ;;  %s2029_s5 = inlined_call_operand.hbm [shape: bf16[2,16,16,64], index: 5, kind: output, shape index: {}]  }
   0x1   :  { %12 = vsyncpa [#allocation3 + $0x1], 0  ;;  %s1519_s18 = smov 0   ;;  %s1521_s19 = smov 0  }
   0x2   :  { %s1523_s20 = smov 0   ;;  %s1525_s21 = smov 0  }
   0x3   :  { %s1527_s22 = smov 0   ;;  %s1529_s23 = smov 0  }
   0x4   :  { %s1531_s24 = smov 0   ;;  %s1533_s25 = smov 0  }
   0x5 LB: > { %s1161_s26 = sadd.s32 4294967295, %s1479_s25   ;;  %s1162_s27 = sadd.s32 4294967294, %s1479_s25   ;;  %s1479_s25 = sphi %s1533_s25, %s18_s25   ;;  %s1475_s24 = sphi %s1531_s24, %s2045_s24   ;;  %s1471_s23 = sphi %s1529_s23, %s2044_s23   ;;  %s1467_s22 = sphi %s1527_s22, %s2043_s22   ;;  %s1463_s21 = sphi %s1525_s21, %s2042_s21   ;;  %s1459_s20 = sphi %s1523_s20, %s2041_s20   ;;  %s1455_s19 = sphi %s1521_s19, %s2040_s19   ;;  %s1451_s18 = sphi %s1519_s18, %s2039_s18  }
   0x6   : > { %s27_s28 = sadd.s32 1, %s1471_s23  ;;  %s30_s29 = sadd.s32 1, %s1475_s24 }
   0x7   : > { %p28_p0 = scmp.ge.s32.totalorder %s27_s28, 2  ;;  %p191_p1 = scmp.ne.s32.totalorder %s1459_s20, %s1455_s19 }
   0x8   : > { %p192_p2 = scmp.eq.s32.totalorder %s1161_s26, 3  ;;  %p197_p5 = scmp.ne.s32.totalorder %s1455_s19, %s1451_s18 }
   0x9   : > { %s2047_s28 = smov (%p28_p0, %s27_s28), 0  ;;  %s2049_s29 = smov (!%p28_p0, %s30_s29), %s1475_s24 }
   0xa   : > { %s177_s30 = ssub.s32 %s1471_s23, %s2047_s28  ;;  %p1570_p3 = por %p192_p2, %p191_p1 }
   0xb   : > { %p32_p4 = scmp.ge.s32.totalorder %s2049_s29, 2  ;;  %p198_p6 = scmp.eq.s32.totalorder %s1162_s27, 3 }
   0xc   : > { %p1171_p7 = scmp.ge.s32.totalorder %s1479_s25, 1  ;;  %p276_p9 = scmp.lt.s32.totalorder %s1479_s25, 5 }
   0xd   : > { %s2051_s29 = smov (%p32_p4, %s2049_s29), 0  ;;  %p1579_p8 = por %p198_p6, %p197_p5 }
   0xe   : > { %s176_s8 = ssub.s32 %s1475_s24, %s2051_s29  ;;  %s181_s9 = sadd.s32 1, %s1459_s20 }
   0xf   : > { %s178_s10 = sor.u32 %s177_s30, %s176_s8  ;;  %p277_p10 = pnand %p1171_p7, %p276_p9 }
  0x10   : > { %p179_p11 = scmp.eq.s32.totalorder %s178_s10, 0  ;;  %s1591_s12 = sshll.u32 (!%p277_p10), %s1463_s21, 3  ;;  %vm588_vm0 = vsmask.f32 (!%p277_p10), 7424  ;;  %vm587_vm1 = vcmask (!%p277_p10), 1047552   ;;  %vm544_vm5 = vcmask (!%p277_p10), 1040384  }
  0x11   : > { %280 = sbr.rel (%p277_p10) target bundleno = 540 (0x21c), region = 40  ;;  %p336_p12 = scmp.lt.s32.totalorder (!%p277_p10), %s1467_s22, 1  ;;  %vm1658_vm2 = vmand (!%p277_p10), %vm587_vm1, %vm588_vm0  ;;  %vm545_vm6 = vsmask.f32 (!%p277_p10), 256  ;;  %vm816_vm8 = vcmask (!%p277_p10), 1044480   ;;  %vm817_vm9 = vcmask (!%p277_p10), 1045504  }
  0x12   : > { %s1588_s11 = scalar_select %p179_p11, %s1459_s20, %s181_s9  }
  0x13   : > { %p338_p13 = scmp.lt.s32.totalorder (!%p277_p10), %s1591_s12, 15  ;;  %s1245_s27 = sadd.s32 (!%p277_p10), 8, %s1591_s12  ;;  %vm1760_vm7 = vmand (!%p277_p10), %vm544_vm5, %vm545_vm6  ;;  %v1384_v17 = vld [vmem:[%s2027_s3 + $0x8] sm:$0x3f] (!%p277_p10)   ;;  %vm650_vm10 = vcmask (!%p277_p10), 23552   ;;  %vm681_vm11 = vcmask (!%p277_p10), 48128  }
  0x14   : > { %p1612_p0 = scmp.lt.s32.totalorder (!%p277_p10), %s1245_s27, 15  ;;  %p390_p1 = scmp.lt.s32.totalorder (!%p277_p10), %s1463_s21, 1  ;;  %vm743_vm12 = vcmask (!%p277_p10), 72704   ;;  %vm760_vm13 = vcmask (!%p277_p10), 146432   ;;  %vm799_vm14 = vcmask (!%p277_p10), 220160   ;;  %vm1000_vm15 = vcmask (!%p277_p10), 519168  }
  0x15   : > { %p382_p4 = scmp.gt.s32.totalorder (!%p277_p10), %s1463_s21, 0 }
  0x18   : > { %s337_s13 = scalar_select %p336_p12, %s1467_s22, 1 }
  0x19   : > { %s339_s14 = scalar_select %p338_p13, %s1591_s12, 15 }
  0x1a   : > { %s1597_s15 = sshll.u32 %s337_s13, 5  ;;  %s1481_s13 = smov 3  }
  0x1b   : > { %s1174_s16 = sshll.u32 %s339_s14, 1  ;;  %s2053_s27 = smov (!%p1612_p0, %s1245_s27), 15 }
  0x1c   : > { %s342_s17 = sadd.s32 %s1597_s15, %s1174_s16  ;;  %s1654_s14 = sadd.s32 4294967295, %s1591_s12 }
  0x1d   : > { %s1176_s26 = sshll.u32 %s342_s17, 2  ;;  %s2055_s27 = smov (!%p1612_p0, %s2053_s27), 15 }
  0x1e   : > { %s1604_s9 = scalar_lea.vmem %s2024_s0, %s1176_s26  ;;  %s1191_s16 = sshll.u32 %s2055_s27, 1 }
  0x1f   : > { %v1607_v0 = vld [vmem:[%s1604_s9 + $0x8] sm:$0xff]   ;;  %v1610_v1 = vld [vmem:[%s1604_s9] sm:$0xff]   ;;  %v1636_v6 = vld [vmem:[%s1604_s9 + $0x30] sm:$0xff]   ;;  %s393_s12 = scalar_select %p390_p1, 1, 0 }
  0x20   : > { %604 = vrot.lane.b32.xlu1 %v1607_v0, %s1481_s13  ;;  %v1619_v2 = vld [vmem:[%s1604_s9 + $0x28] sm:$0xff]   ;;  %602 = vrot.lane.b32.xlu0 %v1610_v1, %s1481_s13  ;;  %v1624_v3 = vld [vmem:[%s1604_s9 + $0x20] sm:$0xff]   ;;  %v472_v4 = vshrl.u32 %v1610_v1, 16  ;;  %v475_v5 = vshll.u32 %v1610_v1, 16  ;;  %v482_v13 = vshll.u32 %v1607_v0, 16  ;;  %v479_v16 = vshrl.u32 %v1607_v0, 16  ;;  %s373_s17 = sadd.s32 %s1191_s16, %s1597_s15 }
  0x21   : > { %v500_v7 = vshrl.u32 %v1624_v3, 16  ;;  %v503_v8 = vshll.u32 %v1624_v3, 16  ;;  %v1645_v10 = vld [vmem:[%s1604_s9 + $0x10] sm:$0xff]   ;;  %v507_v11 = vshrl.u32 %v1619_v2, 16  ;;  %v510_v12 = vshll.u32 %v1619_v2, 16  ;;  %v1668_v26 = vld [vmem:[%s1604_s9 + $0x18] sm:$0xff]  }
  0x22   : > { %v559_v9 = vrot.slane %v475_v5, 1  ;;  %v474_v18 = vrot.slane %v472_v4, 7  ;;  %v561_v20 = vrot.slane %v482_v13, 1  ;;  %v517_v21 = vshll.u32 %v1636_v6, 16  ;;  %p348_p2 = scmp.gt.s32.totalorder %s1654_s14, 0  ;;  %s1482_s26 = smov 6  }
  0x23   : > { %v567_v14 = vrot.slane %v503_v8, 1  ;;  %v569_v19 = vrot.slane %v510_v12, 1  ;;  %v481_v23 = vrot.slane %v479_v16, 7  ;;  %v514_v24 = vshrl.u32 %v1636_v6, 16  ;;  %v1381_v40 = vld [vmem:[%s1604_s9 + $0x38] sm:$0xff]   ;;  %s1193_s30 = sshll.u32 %s373_s17, 2 }
  0x24   : > { %612 = vrot.lane.b32.xlu1 %v1619_v2, %s1481_s13  ;;  %610 = vrot.lane.b32.xlu0 %v1624_v3, %s1481_s13  ;;  %v560_v15 = vor.u32 %v559_v9, %v472_v4  ;;  %v489_v25 = vshll.u32 %v1645_v10, 16  ;;  %v509_v27 = vrot.slane %v507_v11, 7  ;;  %v571_v29 = vrot.slane %v517_v21, 1  ;;  %p1179_p5 = scmp.lt.s32.totalorder %s1654_s14, 15  ;;  %s375_s9 = scalar_lea.vmem %s2026_s2, %s1193_s30 }
  0x25   : > { %v568_v22 = vor.u32 %v567_v14, %v500_v7  ;;  %v570_v28 = vor.u32 %v569_v19, %v507_v11  ;;  %v486_v30 = vshrl.u32 %v1645_v10, 16  ;;  %v562_v33 = vor.u32 %v561_v20, %v479_v16  ;;  %v391_v48 = vld [vmem:[%s375_s9] sm:$0xf]  ;;  %v392_v49 = vld [vmem:[%s375_s9 + $0x4] sm:$0xf]  ;;  %s349_s10 = scalar_select %p348_p2, %s1654_s14, 0 }
  0x26   : > { %v591_v32 = vsel %vm1658_vm2, %v560_v15, 0  ;;  %v563_v34 = vrot.slane %v489_v25, 1  ;;  %v502_v35 = vrot.slane %v500_v7, 7  ;;  %v516_v36 = vrot.slane %v514_v24, 7 }
  0x27   : > { %v595_v31 = vsel %vm1658_vm2, %v568_v22, 0  ;;  %v394_v37 = vstv %s393_s12  ;;  %v572_v38 = vor.u32 %v571_v29, %v514_v24  ;;  %v488_v39 = vrot.slane %v486_v30, 7  ;;  %s385_s12 = scalar_select %p382_p4, 1, 0 }
  0x28   : > { %614 = vrot.lane.b32.xlu1 %v1636_v6, %s1481_s13  ;;  %606 = vrot.lane.b32.xlu0 %v1645_v10, %s1481_s13  ;;  %v496_v41 = vshll.u32 %v1668_v26, 16  ;;  %vm1688_vm3 = vcmp.eq.s32.totalorder %v394_v37, 1  ;;  %v596_v43 = vsel %vm1658_vm2, %v570_v28, 0  ;;  %v564_v44 = vor.u32 %v563_v34, %v486_v30  ;;  %s2057_s10 = smov (!%p1179_p5, %s349_s10), 15 }
  0x29   : > { %v493_v45 = vshrl.u32 %v1668_v26, 16  ;;  %v1700_v46 = vor.u32 %v482_v13, %v481_v23  ;;  %v592_v47 = vsel %vm1658_vm2, %v562_v33, 0  ;;  %v1706_v50 = vor.u32 %v475_v5, %v474_v18  ;;  %s1184_s16 = sshll.u32 %s2057_s10, 1 }
  0x2a   : > { %v1708_v51 = vor.u32 %v510_v12, %v509_v27  ;;  %v396_v53 = vsel %vm1688_vm3, %v391_v48, 0  ;;  %v397_v54 = vsel %vm1688_vm3, %v392_v49, 0  ;;  %v521_v55 = vshrl.u32 %v1381_v40, 16  ;;  %s356_s14 = sadd.s32 %s1184_s16, %s1597_s15  ;;  %s332_s16 = sand.u32 1, %s1455_s19  }
  0x2b   : > { %v495_v52 = vrot.slane %v493_v45, 7  ;;  %v597_v56 = vsel %vm1658_vm2, %v572_v38, 0  ;;  %v565_v57 = vrot.slane %v496_v41, 1  ;;  %v1203_v58 = vcombine.low %v396_v53, %v397_v54  ;;  %s1186_s17 = sshll.u32 %s356_s14, 2  ;;  %s1172_s30 = sshll.u32 %s332_s16, 6 }
  0x2c   : > { %640 = vrot.lane.b32.xlu1 %v595_v31, %s1482_s26  ;;  %632 = vrot.lane.b32.xlu0 %v591_v32, %s1482_s26  ;;  %v524_v59 = vshll.u32 %v1381_v40, 16  ;;  %v593_v60 = vsel %vm1658_vm2, %v564_v44, 0  ;;  %v523_v61 = vrot.slane %v521_v55, 7  ;;  %v1729_v62 = vor.u32 %v503_v8, %v502_v35  ;;  %s358_s8 = scalar_lea.vmem %s2025_s1, %s1186_s17  ;;  %v1383_v35 = vld [vmem:[%s2027_s3] sm:$0xff]   ;;  %s1915_s27 = scalar_lea.vmem [#allocation2], %s1172_s30 }
  0x2d   : > { %v1731_v63 = vor.u32 %v517_v21, %v516_v36  ;;  %v528_v0 = vshrl.u32 %v1203_v58, 16  ;;  %v531_v1 = vshll.u32 %v1203_v58, 16  ;;  %v1733_v2 = vor.u32 %v489_v25, %v488_v39  ;;  %v383_v10 = vld [vmem:[%s358_s8] sm:$0xf]  ;;  %v384_v11 = vld [vmem:[%s358_s8 + $0x4] sm:$0xf]  ;;  %1273 = vmatprep.subr.bf16.mxu0 %v1383_v35  ;;  %1293 = vmatprep.subr.bf16.mxu1 %v1383_v35 }
  0x2e   : > { %v386_v4 = vstv %s385_s12  ;;  %v566_v6 = vor.u32 %v565_v57, %v493_v45  ;;  %v1741_v7 = vor.u32 %v524_v59, %v523_v61  ;;  %v1743_v8 = vor.u32 %v496_v41, %v495_v52  ;;  %1274 = vmatpush3.bf16.msra.mxu0 %v1383_v35  ;;  %1295 = vmatpush3.bf16.msra.mxu1 %v1383_v35  ;;  %s1262_s8 = sshll.u32 %s1463_s21, 4  ;;  %s1234_s15 = sshll.u32 %s1467_s22, 5 }
  0x2f   : > { %v530_v5 = vrot.slane %v528_v0, 7  ;;  %vm387_vm4 = vcmp.eq.s32.totalorder %v386_v4, 1  ;;  %v575_v3 = vrot.slane %v531_v1, 1  ;;  %v573_v9 = vrot.slane %v524_v59, 1  ;;  %s1937_s9 = sadd.s32 %s1262_s8, %s1234_s15  ;;  %s1034_s22 = sshll.u32 %s1915_s27, 4  ;;  %s1956_s22 = int_to_ptr.vmem [resolvable:$true] %s1034_s22 }
  0x30   : > { %642 = vrot.lane.b32.xlu1 %v596_v43, %s1482_s26  ;;  %634 = vrot.lane.b32.xlu0 %v592_v47, %s1482_s26  ;;  %v388_v13 = vsel %vm387_vm4, %v383_v10, 0  ;;  %v389_v14 = vsel %vm387_vm4, %v384_v11, 0  ;;  %v594_v16 = vsel %vm1658_vm2, %v566_v6, 0  ;;  %v1483_v36 = vmov 65535   ;;  %s1235_s21 = sshll.u32 %s1937_s9, 6  ;;  %s1385_s14 = scalar_lea.vmem %s1956_s22, 1024 }
  0x31   : > { %v1745_v12 = vor.u32 %v531_v1, %v530_v5  ;;  %v1194_v15 = vcombine.low %v388_v13, %v389_v14  ;;  %v576_v18 = vor.u32 %v575_v3, %v528_v0  ;;  %v574_v19 = vor.u32 %v573_v9, %v521_v55  ;;  %p1386_p6 = scmp.ne.s32.totalorder %s1956_s22, %s1385_s14  ;;  %s1486_s17 = smov [#allocation2]  }
  0x32   : > { %v818_v37 = vsel %vm816_vm8, 4294967295, %v1483_v36  ;;  %v548_v43 = vsel %vm1760_vm7, 0, %v1706_v50  ;;  %v553_v48 = vsel %vm1760_vm7, 0, %v1708_v51  ;;  %v549_v50 = vsel %vm1760_vm7, 0, %v1700_v46  ;;  %s1389_s30 = sshll.u32 %s1486_s17, 4  ;;  %s1390_s30 = int_to_ptr.vmem [resolvable:$false] %s1389_s30 }
  0x33   : > { %v465_v20 = vshrl.u32 %v1194_v15, 16  ;;  %v468_v21 = vshll.u32 %v1194_v15, 16  ;;  %v599_v24 = vsel %vm1658_vm2, %v576_v18, 0  ;;  %v598_v25 = vsel %vm1658_vm2, %v574_v19, 0  ;;  %p1387_p7 = pnand %p1386_p6, %p1570_p3  ;;  %s1391_s8 = scalar_lea.vmem %s1390_s30, 2048 }
  0x34   : > { %644 = vrot.lane.b32.xlu1 %v597_v56, %s1482_s26  ;;  %636 = vrot.lane.b32.xlu0 %v593_v60, %s1482_s26  ;;  %v819_v39 = vsel %vm817_vm9, %v818_v37, 0  ;;  %v554_v59 = vsel %vm1760_vm7, 0, %v1731_v63  ;;  %v550_v61 = vsel %vm1760_vm7, 0, %v1733_v2  ;;  %v555_v3 = vsel %vm1760_vm7, 0, %v1741_v7  ;;  %p1392_p10 = scmp.lt.s32.totalorder %s1956_s22, %s1390_s30  ;;  %p1393_p11 = scmp.lt.s32.totalorder %s1391_s8, %s1385_s14 }
  0x35   : > { %v467_v22 = vrot.slane %v465_v20, 7  ;;  %v557_v23 = vrot.slane %v468_v21, 1  ;;  %v821_v42 = vand.u32 %v1384_v17, %v819_v39  ;;  %v551_v9 = vsel %vm1760_vm7, 0, %v1743_v8  ;;  %p1388_p9 = pneg %p1387_p7 }
  0x36   : > { %v556_v18 = vsel %vm1760_vm7, 0, %v1745_v12  ;;  %p1394_p12 = por %p1393_p11, %p1392_p10 }
  0x37   : > { %v1758_v27 = vor.u32 %v468_v21, %v467_v22  ;;  %1275 = vmatprep.subr.bf16.mxu0 %v821_v42  ;;  %1294 = vmatprep.subr.bf16.mxu1 %v821_v42 }
  0x38   : > { %616 = vrot.lane.b32.xlu1 %v1381_v40, %s1481_s13  ;;  %608 = vrot.lane.b32.xlu0 %v1668_v26, %s1481_s13  ;;  %v558_v26 = vor.u32 %v557_v23, %v465_v20  ;;  %v552_v40 = vsel %vm1760_vm7, 0, %v1729_v62  ;;  %p1395_p13 = pnand %p1394_p12, %p1388_p9 }
  0x39   : > { %v547_v29 = vsel %vm1760_vm7, 0, %v1758_v27  ;;  %1276 = vmatpush3.bf16.msra.mxu0 %v821_v42  ;;  %1296 = vmatpush3.bf16.msra.mxu1 %v821_v42 }
  0x3a   : > { %v590_v30 = vsel %vm1658_vm2, %v558_v26, 0 }
  0x3c   : > { %638 = vrot.lane.b32.xlu1 %v594_v16, %s1482_s26  ;;  %618 = vrot.lane.b32.xlu0 %v1203_v58, %s1481_s13 }
  0x40   : > { %648 = vrot.lane.b32.xlu1 %v599_v24, %s1482_s26  ;;  %646 = vrot.lane.b32.xlu0 %v598_v25, %s1482_s26 }
  0x44   : > { %630 = vrot.lane.b32.xlu1 %v590_v30, %s1482_s26  ;;  %600 = vrot.lane.b32.xlu0 %v1194_v15, %s1481_s13  ;;  %s1484_s13 = smov 9   ;;  %s1485_s26 = smov 18  }
  0x92   : > { %v605_v31 = vpop.permute.xlu1 %604  ;;  %v603_v32 = vpop.permute.xlu0 %602 }
  0x93   : > { %v656_v47 = vsel %vm650_vm10, %v548_v43, %v603_v32  ;;  %v659_v55 = vsel %vm650_vm10, %v549_v50, %v605_v31 }
  0x96   : > { %v613_v33 = vpop.permute.xlu1 %612  ;;  %v611_v34 = vpop.permute.xlu0 %610 }
  0x97   : > { %v668_v44 = vsel %vm650_vm10, %v552_v40, %v611_v34  ;;  %v671_v51 = vsel %vm650_vm10, %v553_v48, %v613_v33 }
  0x9a   : > { %v615_v38 = vpop.permute.xlu1 %614  ;;  %v607_v41 = vpop.permute.xlu0 %606 }
  0x9b   : > { %v674_v62 = vsel %vm650_vm10, %v554_v59, %v615_v38  ;;  %v662_v1 = vsel %vm650_vm10, %v550_v61, %v607_v41 }
  0x9e   : > { %v641_v45 = vpop.permute.xlu1 %640  ;;  %v633_v49 = vpop.permute.xlu0 %632 }
  0x9f   : > { %v1791_v52 = vsel %vm681_vm11, %v668_v44, %v641_v45  ;;  %v1799_v53 = vsel %vm681_vm11, %v656_v47, %v633_v49 }
  0xa0   : > { %718 = vrot.lane.b32.xlu1 %v1791_v52, %s1484_s13  ;;  %710 = vrot.lane.b32.xlu0 %v1799_v53, %s1484_s13 }
  0xa2   : > { %v643_v54 = vpop.permute.xlu1 %642  ;;  %v635_v56 = vpop.permute.xlu0 %634 }
  0xa3   : > { %v1806_v57 = vsel %vm681_vm11, %v671_v51, %v643_v54  ;;  %v1811_v46 = vsel %vm681_vm11, %v659_v55, %v635_v56  ;;  %v1903_v54 = vld [vmem:[%s2028_s4] ss:$0 sm:$0xff] }
  0xa4   : > { %720 = vrot.lane.b32.xlu1 %v1806_v57, %s1484_s13  ;;  %712 = vrot.lane.b32.xlu0 %v1811_v46, %s1484_s13 }
  0xa6   : > { %v645_v58 = vpop.permute.xlu1 %644  ;;  %v637_v60 = vpop.permute.xlu0 %636 }
  0xa7   : > { %v1828_v63 = vsel %vm681_vm11, %v674_v62, %v645_v58  ;;  %v1833_v2 = vsel %vm681_vm11, %v662_v1, %v637_v60 }
  0xa8   : > { %735 = vrot.lane.b32.xlu1 %v1806_v57, %s1485_s26  ;;  %727 = vrot.lane.b32.xlu0 %v1811_v46, %s1485_s26 }
  0xaa   : > { %v617_v0 = vpop.permute.xlu1 %616  ;;  %v609_v4 = vpop.permute.xlu0 %608 }
  0xab   : > { %v677_v11 = vsel %vm650_vm10, %v555_v3, %v617_v0  ;;  %v665_v13 = vsel %vm650_vm10, %v551_v9, %v609_v4 }
  0xac   : > { %737 = vrot.lane.b32.xlu1 %v1828_v63, %s1485_s26  ;;  %729 = vrot.lane.b32.xlu0 %v1833_v2, %s1485_s26 }
  0xae   : > { %v639_v5 = vpop.permute.xlu1 %638  ;;  %v619_v6 = vpop.permute.xlu0 %618 }
  0xaf   : > { %v691_v7 = vsel %vm681_vm11, %v665_v13, %v639_v5  ;;  %v680_v21 = vsel %vm650_vm10, %v556_v18, %v619_v6 }
  0xb0   : > { %722 = vrot.lane.b32.xlu1 %v1828_v63, %s1484_s13  ;;  %714 = vrot.lane.b32.xlu0 %v1833_v2, %s1484_s13 }
  0xb2   : > { %v649_v10 = vpop.permute.xlu1 %648  ;;  %v647_v14 = vpop.permute.xlu0 %646 }
  0xb3   : > { %v699_v15 = vsel %vm681_vm11, %v677_v11, %v647_v14  ;;  %v701_v22 = vsel %vm681_vm11, %v680_v21, %v649_v10 }
  0xb4   : > { %724 = vrot.lane.b32.xlu1 %v699_v15, %s1484_s13  ;;  %716 = vrot.lane.b32.xlu0 %v691_v7, %s1484_s13  ;;  %s1954_s13 = scalar_lea.hbm %s2029_s5, %s1235_s21 }
  0xb6   : > { %v631_v8 = vpop.permute.xlu1 %630  ;;  %v601_v16 = vpop.permute.xlu0 %600 }
  0xb7   : > { %v653_v19 = vsel %vm650_vm10, %v547_v29, %v601_v16 }
  0xb8   : > { %739 = vrot.lane.b32.xlu1 %v699_v15, %s1485_s26  ;;  %731 = vrot.lane.b32.xlu0 %v691_v7, %s1485_s26  ;;  %v683_v20 = vsel %vm681_vm11, %v653_v19, %v631_v8 }
  0xbc   : > { %741 = vrot.lane.b32.xlu1 %v701_v22, %s1485_s26  ;;  %733 = vrot.lane.b32.xlu0 %v1791_v52, %s1485_s26  ;;  %s1972_s26 = scalar_lea.sflag [#allocation3], %s332_s16 }
 0x112   : > { %v719_v12 = vpop.permute.xlu1 %718  ;;  %v711_v23 = vpop.permute.xlu0 %710 }
 0x113   : > { %v753_v26 = vsel %vm743_vm12, %v691_v7, %v719_v12  ;;  %v745_v28 = vsel %vm743_vm12, %v683_v20, %v711_v23 }
 0x116   : > { %v721_v24 = vpop.permute.xlu1 %720  ;;  %v713_v25 = vpop.permute.xlu0 %712 }
 0x117   : > { %v755_v32 = vsel %vm743_vm12, %v1791_v52, %v721_v24  ;;  %v747_v34 = vsel %vm743_vm12, %v1799_v53, %v713_v25 }
 0x11a   : > { %v736_v27 = vpop.permute.xlu1 %735  ;;  %v728_v29 = vpop.permute.xlu0 %727 }
 0x11b   : > { %v770_v30 = vsel %vm760_vm13, %v753_v26, %v736_v27  ;;  %v762_v31 = vsel %vm760_vm13, %v745_v28, %v728_v29 }
 0x11c   : > { %1285 = vmatprep.mubr.msk.bf16.mxu1 %vm799_vm14, %v770_v30  ;;  %1277 = vmatprep.mubr.msk.bf16.mxu0 %vm799_vm14, %v762_v31 }
 0x11e   : > { %v738_v33 = vpop.permute.xlu1 %737  ;;  %v730_v17 = vpop.permute.xlu0 %729 }
 0x11f   : > { %v772_v35 = vsel %vm760_vm13, %v755_v32, %v738_v33  ;;  %v764_v36 = vsel %vm760_vm13, %v747_v34, %v730_v17 }
 0x120   : > { %1286 = vmatmul.mubr.msk.bf16.vlgmr.msra.gmra.mrb[0].mxu1 %vm799_vm14, %v772_v35  ;;  %1278 = vmatmul.mubr.msk.bf16.vlgmr.msra.gmra.mrb[0].mxu0 %vm799_vm14, %v764_v36 }
 0x122   : > { %v723_v37 = vpop.permute.xlu1 %722  ;;  %v715_v38 = vpop.permute.xlu0 %714 }
 0x123   : > { %v757_v41 = vsel %vm743_vm12, %v1806_v57, %v723_v37  ;;  %v749_v42 = vsel %vm743_vm12, %v1811_v46, %v715_v38 }
 0x126   : > { %v725_v39 = vpop.permute.xlu1 %724  ;;  %v717_v40 = vpop.permute.xlu0 %716 }
 0x127   : > { %v759_v48 = vsel %vm743_vm12, %v1828_v63, %v725_v39  ;;  %v751_v49 = vsel %vm743_vm12, %v1833_v2, %v717_v40 }
 0x12a   : > { %v740_v43 = vpop.permute.xlu1 %739  ;;  %v732_v44 = vpop.permute.xlu0 %731 }
 0x12b   : > { %v774_v45 = vsel %vm760_vm13, %v757_v41, %v740_v43  ;;  %v766_v47 = vsel %vm760_vm13, %v749_v42, %v732_v44 }
 0x12c   : > { %1281 = vmatprep.mubr.msk.bf16.mxu0 %vm799_vm14, %v766_v47  ;;  %1289 = vmatprep.mubr.msk.bf16.mxu1 %vm799_vm14, %v774_v45 }
 0x12e   : > { %v742_v52 = vpop.permute.xlu1 %741  ;;  %v734_v50 = vpop.permute.xlu0 %733 }
 0x12f   : > { %v776_v53 = vsel %vm760_vm13, %v759_v48, %v742_v52  ;;  %v768_v51 = vsel %vm760_vm13, %v751_v49, %v734_v50 }
 0x130   : > { %1282 = vmatmul.mubr.msk.bf16.gmra.mrb[4].mxu0 %vm799_vm14, %v768_v51  ;;  %1290 = vmatmul.mubr.msk.bf16.gmra.mrb[4].mxu1 %vm799_vm14, %v776_v53 }
 0x1f3   : > { %v1287_v55 = vpop.f32.mrb[0].mxu1  ;;  %v1279_v56 = vpop.f32.mrb[0].mxu0 }
 0x1f4   : > { %v898_v57 = vadd.f32 %v1287_v55, %v1903_v54  ;;  %v889_v46 = vpop.f32.mrb[1].mxu1  ;;  %v866_v58 = vadd.f32 %v1279_v56, %v1903_v54  ;;  %v857_v59 = vpop.f32.mrb[1].mxu0 }
 0x1f5   : > { %v890_v60 = vadd.f32 %v1903_v54, %v889_v46  ;;  %v1288_v61 = vpop.f32.mrb[2].mxu1  ;;  %v858_v0 = vadd.f32 %v1903_v54, %v857_v59  ;;  %v1280_v1 = vpop.f32.mrb[2].mxu0 }
 0x1f6   : > { %v930_v62 = vmax.f32 %v898_v57, 0.0  ;;  %v901_v4 = vadd.f32 %v1288_v61, %v1903_v54  ;;  %v892_v63 = vpop.f32.mrb[3].mxu1  ;;  %v922_v2 = vmax.f32 %v866_v58, 0.0  ;;  %v869_v6 = vadd.f32 %v1280_v1, %v1903_v54  ;;  %v860_v3 = vpop.f32.mrb[3].mxu0 }
 0x1f7   : > { %v928_v5 = vmax.f32 %v890_v60, 0.0  ;;  %v893_v9 = vadd.f32 %v1903_v54, %v892_v63  ;;  %v920_v11 = vmax.f32 %v858_v0, 0.0  ;;  %v861_v14 = vadd.f32 %v1903_v54, %v860_v3 }
 0x1f8   : > { %v1256_v10 = vpack.c.bf16 %v930_v62, %v930_v62  ;;  %v931_v13 = vmax.f32 %v901_v4, 0.0  ;;  %v1248_v15 = vpack.c.bf16 %v922_v2, %v922_v2  ;;  %v923_v8 = vmax.f32 %v869_v6, 0.0 }
 0x1f9   : > { %v1254_v7 = vpack.c.bf16 %v928_v5, %v928_v5  ;;  %v929_v16 = vmax.f32 %v893_v9, 0.0  ;;  %v1246_v18 = vpack.c.bf16 %v920_v11, %v920_v11  ;;  %v921_v20 = vmax.f32 %v861_v14, 0.0 }
 0x1fa   : > { %1011 = vst.msk [vmem:[%s1915_s27 + $0x28] sm:$0xf] %vm1000_vm15, %v1256_v10  ;;  %v1257_v19 = vpack.c.bf16 %v931_v13, %v931_v13  ;;  %1003 = vst.msk [vmem:[%s1915_s27 + $0x8] sm:$0xf] %vm1000_vm15, %v1248_v15  ;;  %v1249_v21 = vpack.c.bf16 %v923_v8, %v923_v8 }
 0x1fb   : > { %1009 = vst.msk [vmem:[%s1915_s27 + $0x20] sm:$0xf] %vm1000_vm15, %v1254_v7  ;;  %v1255_v22 = vpack.c.bf16 %v929_v16, %v929_v16  ;;  %1001 = vst.msk [vmem:[%s1915_s27] sm:$0xf] %vm1000_vm15, %v1246_v18  ;;  %v1247_v12 = vpack.c.bf16 %v921_v20, %v921_v20 }
 0x1fc   : > { %1012 = vst.msk [vmem:[%s1915_s27 + $0x2c] sm:$0xf] %vm1000_vm15, %v1257_v19  ;;  %1004 = vst.msk [vmem:[%s1915_s27 + $0xc] sm:$0xf] %vm1000_vm15, %v1249_v21 }
 0x1fd   : > { %1010 = vst.msk [vmem:[%s1915_s27 + $0x24] sm:$0xf] %vm1000_vm15, %v1255_v22  ;;  %1002 = vst.msk [vmem:[%s1915_s27 + $0x4] sm:$0xf] %vm1000_vm15, %v1247_v12 }
 0x203   : > { %v1283_v23 = vpop.f32.mrb[4].mxu0  ;;  %v1291_v24 = vpop.f32.mrb[4].mxu1 }
 0x204   : > { %v882_v25 = vadd.f32 %v1283_v23, %v1903_v54  ;;  %v914_v26 = vadd.f32 %v1291_v24, %v1903_v54  ;;  %v873_v27 = vpop.f32.mrb[5].mxu0  ;;  %v905_v28 = vpop.f32.mrb[5].mxu1 }
 0x205   : > { %v874_v29 = vadd.f32 %v1903_v54, %v873_v27  ;;  %v906_v30 = vadd.f32 %v1903_v54, %v905_v28  ;;  %v1284_v31 = vpop.f32.mrb[6].mxu0  ;;  %v1292_v32 = vpop.f32.mrb[6].mxu1 }
 0x206   : > { %v926_v33 = vmax.f32 %v882_v25, 0.0  ;;  %v934_v34 = vmax.f32 %v914_v26, 0.0  ;;  %v885_v35 = vadd.f32 %v1284_v31, %v1903_v54  ;;  %v917_v17 = vadd.f32 %v1292_v32, %v1903_v54  ;;  %v876_v36 = vpop.f32.mrb[7].mxu0  ;;  %v908_v37 = vpop.f32.mrb[7].mxu1 }
 0x207   : > { %v924_v38 = vmax.f32 %v874_v29, 0.0  ;;  %v932_v39 = vmax.f32 %v906_v30, 0.0  ;;  %v877_v40 = vadd.f32 %v1903_v54, %v876_v36  ;;  %v909_v41 = vadd.f32 %v1903_v54, %v908_v37 }
 0x208   : > { %v1252_v42 = vpack.c.bf16 %v926_v33, %v926_v33  ;;  %v1260_v43 = vpack.c.bf16 %v934_v34, %v934_v34  ;;  %v927_v44 = vmax.f32 %v885_v35, 0.0  ;;  %v935_v45 = vmax.f32 %v917_v17, 0.0 }
 0x209   : > { %v1250_v47 = vpack.c.bf16 %v924_v38, %v924_v38  ;;  %v1258_v48 = vpack.c.bf16 %v932_v39, %v932_v39  ;;  %v925_v49 = vmax.f32 %v877_v40, 0.0  ;;  %v933_v52 = vmax.f32 %v909_v41, 0.0 }
 0x20a   : > { %1007 = vst.msk [vmem:[%s1915_s27 + $0x18] sm:$0xf] %vm1000_vm15, %v1252_v42  ;;  %1015 = vst.msk [vmem:[%s1915_s27 + $0x38] sm:$0xf] %vm1000_vm15, %v1260_v43  ;;  %v1253_v50 = vpack.c.bf16 %v927_v44, %v927_v44  ;;  %v1261_v53 = vpack.c.bf16 %v935_v45, %v935_v45 }
 0x20b   : > { %1005 = vst.msk [vmem:[%s1915_s27 + $0x10] sm:$0xf] %vm1000_vm15, %v1250_v47  ;;  %1013 = vst.msk [vmem:[%s1915_s27 + $0x30] sm:$0xf] %vm1000_vm15, %v1258_v48  ;;  %v1251_v51 = vpack.c.bf16 %v925_v49, %v925_v49  ;;  %v1259_v54 = vpack.c.bf16 %v933_v52, %v933_v52 }
 0x20c   : > { %1008 = vst.msk [vmem:[%s1915_s27 + $0x1c] sm:$0xf] %vm1000_vm15, %v1253_v50  ;;  %1016 = vst.msk [vmem:[%s1915_s27 + $0x3c] sm:$0xf] %vm1000_vm15, %v1261_v53 }
 0x20d   : > { %1006 = vst.msk [vmem:[%s1915_s27 + $0x14] sm:$0xf] %vm1000_vm15, %v1251_v51  ;;  %1014 = vst.msk [vmem:[%s1915_s27 + $0x34] sm:$0xf] %vm1000_vm15, %v1259_v54 }
 0x20e   : > { %1398 = shalt.err (!%p1395_p13)
}
 0x20f   : > { %s1399_s16 = scalar_lea.hbm %s1954_s13, 1024  ;;  %s1403_s9 = scalar_lea.hbm %s2029_s5, 4096 }
 0x210   : > { %p1400_p0 = scmp.ne.s32.totalorder %s1954_s13, %s1399_s16  ;;  %p1404_p4 = scmp.lt.u32.totalorder %s1954_s13, %s2029_s5 }
 0x211   : > { %p1405_p5 = scmp.lt.u32.totalorder %s1403_s9, %s1399_s16  ;;  %p1407_p7 = scmp.lt.u32.totalorder %s1399_s16, %s1954_s13 }
 0x212   : > { %p1401_p1 = pnand %p1400_p0, %p1570_p3 }
 0x213   : > { %p1406_p6 = por %p1405_p5, %p1404_p4 }
 0x214   : > { %p1402_p2 = pneg %p1401_p1 }
 0x215   : > { %p1408_p9 = por %p1407_p7, %p1406_p6 }
 0x217   : > { %p1409_p10 = pnand %p1408_p9, %p1402_p2 }
 0x219   : > { %1412 = shalt.err (!%p1409_p10)
}
 0x21a   : > { %s1487_s12 = smov 64   ;;  %s1488_s14 = smov 4  }
 0x21b   : > { %1297 = dma.vmem_to_hbm [thread:$0]  (%p1570_p3), %s1956_s22, 1024, %s1954_s13, %s1972_s26, %s1487_s12, %s1487_s12, %s1488_s14  }
 0x21c PF: > { %p1303_p11 = scmp.ge.s32.totalorder %s1479_s25, 2  ;;  %s1049_s17 = sand.u32 1, %s1451_s18  }
 0x21d   : > { %s1050_s30 = scalar_lea.sflag [#allocation3], %s1049_s17 }
 0x21e   : > { %p1300_p12 = pnand %p1303_p11, %p1579_p8 }
 0x220   : > { %1446 = dma.done.wait (!%p1300_p12), %s1050_s30, 1024  }
 0x221   : > { %1448 = vsyncadd (!%p1300_p12), %s1050_s30, 4294966272  ;;  %s18_s25 = sadd.s32 1, %s1479_s25   ;;  %s2039_s18 = smov %s1455_s19 }
 0x222   : > { %p15_p13 = scmp.ge.s32.totalorder %s18_s25, 6   ;;  %s2040_s19 = smov %s1459_s20 }
 0x223   : > { %s2041_s20 = smov %s1588_s11  ;;  %s2042_s21 = smov %s1471_s23 }
 0x224   : > { %s2043_s22 = smov %s1475_s24  ;;  %s2044_s23 = smov %s2047_s28 }
 0x225   : > { %s2045_s24 = smov %s2051_s29  ;;  %17 = sbr.rel (!%p15_p13) target bundleno = 5 (0x5), region = 81 }
 0x22c   :  { %1055 = vsyncpa [#allocation3], 1 }
 0x22d   :  { %1057 = vsyncpa [#allocation3 + $0x1], 1 }

</bundles_post_ra>
